<compile_context>
chip_gen: v6e
topology: v6e:2x2x1
jax: 0.10.0
libtpu: 0.0.40
codegen_flags: <defaults>
</compile_context>

<pallas_src>
import functools

import jax
import jax.numpy as jnp
from jax.experimental import pallas as pl
from jax.experimental.pallas import tpu as pltpu


def _round_up(x, m):
    return (x + m - 1) // m * m


# ----------------------------------------------------------------------------
# Pallas kernels
# ----------------------------------------------------------------------------
def _gemm_bias_act_nok_kernel(x_ref, w_ref, b_ref, o_ref, *, relu):
    """Whole-K GEMM + bias (+ReLU).  Blocks: x(tm,K) w(K,tn) b(1,tn) o(tm,tn)."""
    y = jnp.dot(x_ref[...], w_ref[...], preferred_element_type=jnp.float32)
    y = y + b_ref[...]
    if relu:
        y = jnp.maximum(y, 0.0)
    o_ref[...] = y.astype(o_ref.dtype)


def _gemm_bias_act_kernel(x_ref, w_ref, b_ref, o_ref, acc_ref, *, relu):
    """K-tiled GEMM + bias (+ReLU) with f32 VMEM accumulator (large-K fallback)."""
    @pl.when(pl.program_id(2) == 0)
    def _init():
        acc_ref[...] = jnp.zeros_like(acc_ref)

    acc_ref[...] += jnp.dot(x_ref[...], w_ref[...],
                            preferred_element_type=jnp.float32)

    @pl.when(pl.program_id(2) == pl.num_programs(2) - 1)
    def _finalize():
        y = acc_ref[...] + b_ref[...]
        if relu:
            y = jnp.maximum(y, 0.0)
        o_ref[...] = y.astype(o_ref.dtype)


def _h_interp_kernel(a_ref, x_ref, o_ref):
    """Row (H) interpolation: o[0] = A_block @ x[0].  A(rb,H), x(1,H,lb), o(1,rb,lb)."""
    o_ref[0] = jnp.dot(a_ref[...], x_ref[0].astype(jnp.float32),
                       preferred_element_type=jnp.float32).astype(o_ref.dtype)


def _lerp_lane_kernel(f_ref, lo_ref, hi_ref, o_ref):
    """Column (W) interpolation lerp on a lane-dense (rows, Wo*C) layout."""
    lo = lo_ref[0].astype(jnp.float32)                 # (rb, lb)
    hi = hi_ref[0].astype(jnp.float32)
    o_ref[0] = (lo + f_ref[...] * (hi - lo)).astype(o_ref.dtype)


# ----------------------------------------------------------------------------
# GEMM wrapper (tile selection, VMEM budgeting)
# ----------------------------------------------------------------------------
_GEMM_VMEM_BUDGET = 24 * 1024 * 1024     # conservative: fits v5e/v6e/v7x scoped VMEM


def _gemm_footprint(tm, tk, tn, out_itemsize, single_k):
    io = 2 * 2 * (tm * tk + tk * tn) + 2 * 4 * tn      # double-buffered bf16 x/w + f32 bias
    acc = 0 if single_k else tm * tn * 4
    out = 2 * tm * tn * out_itemsize
    return io + acc + out


def _select_tiles(m, k, n, out_itemsize):
    # Lane (Cout) tile: 128-multiple exact divisor when possible, else full extent
    # (full-extent blocks avoid N padding + output-slice HBM round trips).
    if n % 128 == 0:
        tn = next(t for t in (512, 384, 256, 128) if n % t == 0)
    else:
        tn = n
    # Row tile: >=128 exact divisor of M when M is large; full extent when small.
    if m <= 512:
        tm = m
    else:
        tm = next((t for t in (512, 384, 256, 128) if m % t == 0), 256)
    # K: keep the whole panel resident (no K grid axis, no padding) when it fits VMEM.
    tk = k
    while _gemm_footprint(tm, tk, tn, out_itemsize, True) > _GEMM_VMEM_BUDGET and tm > 128:
        tm = max(128, _round_up(tm // 2, 16))
    if _gemm_footprint(tm, tk, tn, out_itemsize, True) <= _GEMM_VMEM_BUDGET:
        return tm, tk, tn
    # Large-K fallback: tile K with 128-multiple blocks (K gets zero padded).
    tk = 2048
    while _gemm_footprint(tm, tk, tn, out_itemsize, False) > _GEMM_VMEM_BUDGET and tk > 256:
        tk //= 2
    return tm, tk, tn


def _gemm_bias_act(x2d, wmat, bias, *, relu, out_dtype=jnp.bfloat16):
    """x2d:(M,K) @ wmat:(K,N) + bias:(N,) with a tiled/pipelined Pallas GEMM."""
    m, k = x2d.shape
    n = wmat.shape[1]
    out_isz = jnp.dtype(out_dtype).itemsize
    tm, tk, tn = _select_tiles(m, k, n, out_isz)
    single_k = (tk == k)

    m_pad = _round_up(m, tm)
    n_pad = _round_up(n, tn)
    k_pad = k if single_k else _round_up(k, tk)

    x_p = x2d.astype(jnp.bfloat16)
    w_p = wmat.astype(jnp.bfloat16)
    b_p = bias.astype(jnp.float32).reshape(1, n)
    if (m_pad, k_pad) != (m, k):
        x_p = jnp.pad(x_p, ((0, m_pad - m), (0, k_pad - k)))
    if (k_pad, n_pad) != (k, n):
        w_p = jnp.pad(w_p, ((0, k_pad - k), (0, n_pad - n)))
    if n_pad != n:
        b_p = jnp.pad(b_p, ((0, 0), (0, n_pad - n)))

    cost = pl.CostEstimate(
        flops=2 * m_pad * n_pad * k_pad,
        transcendentals=0,
        bytes_accessed=2 * (m_pad * k_pad + k_pad * n_pad) + m_pad * n_pad * out_isz)
    vmem_limit = int(min(max(1.5 * _gemm_footprint(tm, tk, tn, out_isz, single_k),
                             32 * 1024 * 1024), 48 * 1024 * 1024))

    if single_k:
        out = pl.pallas_call(
            functools.partial(_gemm_bias_act_nok_kernel, relu=relu),
            out_shape=jax.ShapeDtypeStruct((m_pad, n_pad), out_dtype),
            grid_spec=pltpu.PrefetchScalarGridSpec(
                num_scalar_prefetch=0,
                grid=(m_pad // tm, n_pad // tn),
                in_specs=[pl.BlockSpec((tm, tk), lambda i, j: (i, 0)),
                          pl.BlockSpec((tk, tn), lambda i, j: (0, j)),
                          pl.BlockSpec((1, tn), lambda i, j: (0, j))],
                out_specs=pl.BlockSpec((tm, tn), lambda i, j: (i, j))),
            compiler_params=pltpu.CompilerParams(
                dimension_semantics=("parallel", "parallel"),
                vmem_limit_bytes=vmem_limit),
            cost_estimate=cost,
        )(x_p, w_p, b_p)
    else:
        out = pl.pallas_call(
            functools.partial(_gemm_bias_act_kernel, relu=relu),
            out_shape=jax.ShapeDtypeStruct((m_pad, n_pad), out_dtype),
            grid_spec=pltpu.PrefetchScalarGridSpec(
                num_scalar_prefetch=0,
                grid=(m_pad // tm, n_pad // tn, k_pad // tk),
                in_specs=[pl.BlockSpec((tm, tk), lambda i, j, kk: (i, kk)),
                          pl.BlockSpec((tk, tn), lambda i, j, kk: (kk, j)),
                          pl.BlockSpec((1, tn), lambda i, j, kk: (0, j))],
                out_specs=pl.BlockSpec((tm, tn), lambda i, j, kk: (i, j)),
                scratch_shapes=[pltpu.VMEM((tm, tn), jnp.float32)]),
            compiler_params=pltpu.CompilerParams(
                dimension_semantics=("parallel", "parallel", "arbitrary"),
                vmem_limit_bytes=vmem_limit),
            cost_estimate=cost,
        )(x_p, w_p, b_p)

    if (m_pad, n_pad) != (m, n):
        out = out[:m, :n]
    return out


# ----------------------------------------------------------------------------
# Convolution = im2col (XLA glue) + fused Pallas GEMM
# ----------------------------------------------------------------------------
def _im2col(x, kh, kw, stride, padding):
    """x:(N,H,W,C) -> cols:(N,Ho,Wo,kh*kw*C), tap-major/channel-minor ordering."""
    # TODO(synk): patch extraction is XLA-side data movement; an implicit in-kernel
    # im2col (tap grid axis over the padded NHWC input) would avoid the kh*kw re-read.
    n, h, w, c = x.shape
    xp = jnp.pad(x, ((0, 0), (padding, padding), (padding, padding), (0, 0)))
    ho = (h + 2 * padding - kh) // stride + 1
    wo = (w + 2 * padding - kw) // stride + 1
    taps = []
    for i in range(kh):
        for j in range(kw):
            taps.append(jax.lax.slice(
                xp, (0, i, j, 0),
                (n, i + stride * (ho - 1) + 1, j + stride * (wo - 1) + 1, c),
                (1, stride, stride, 1)))
    cols = jnp.concatenate(taps, axis=-1)
    return cols, ho, wo


def conv2d(x, w, b=None, *, stride=1, padding=None, relu=False, bn=None,
           out_dtype=jnp.bfloat16):
    """Conv2d as im2col + Pallas GEMM.  x:(N,H,W,Cin), w:(KH,KW,Cin,Cout).

    bn=(gamma,beta,mean,var,eps) folds an inference BatchNorm (no nonlinearity in
    between) directly into the conv weights and bias.
    """
    kh, kw, cin, cout = w.shape
    if padding is None:
        padding = kh // 2
    n = x.shape[0]

    w = w.astype(jnp.float32)
    bias = jnp.zeros((cout,), jnp.float32) if b is None else b.astype(jnp.float32)
    if bn is not None:
        gamma, beta, mean, var, eps = bn
        scale = gamma / jnp.sqrt(var + eps)          # (Cout,)
        w = w * scale                                # fold into weights
        bias = (bias - mean) * scale + beta          # fold into bias

    # im2col in bf16 so the kh*kw-expanded intermediate is half the HBM bytes.
    cols, ho, wo = _im2col(x.astype(jnp.bfloat16), kh, kw, stride, padding)
    out = _gemm_bias_act(cols.reshape(n * ho * wo, kh * kw * cin),
                         w.reshape(kh * kw * cin, cout), bias,
                         relu=relu, out_dtype=out_dtype)
    return out.reshape(n, ho, wo, cout)


def depth_head(x, w, b):
    """3x3 Cout=1 conv + ReLU; routed through the MXU GEMM (K-reduction on the MXU).

    The 1-lane output tile is negligible writeback traffic at any resolution.
    """
    return conv2d(x, w, b, stride=1, relu=True, out_dtype=jnp.float32)


# ----------------------------------------------------------------------------
# Bilinear resize (align_corners=True), separable: H-GEMM pass + W lerp pass
# ----------------------------------------------------------------------------
def _interp_matrix(out_size, in_size):
    """align_corners=True bilinear interpolation matrix, shape (out_size, in_size)."""
    if in_size == 1:
        return jnp.ones((out_size, 1), jnp.float32)
    if out_size == 1:
        pos = jnp.zeros((1,), jnp.float32)
    else:
        pos = jnp.arange(out_size, dtype=jnp.float32) * (in_size - 1) / (out_size - 1)
    lo = jnp.clip(jnp.floor(pos), 0, in_size - 1)
    hi = jnp.clip(lo + 1, 0, in_size - 1)
    frac = pos - lo
    cols = jnp.arange(in_size, dtype=jnp.float32)[None, :]
    m = ((cols == lo[:, None]) * (1.0 - frac[:, None])
         + (cols == hi[:, None]) * frac[:, None])
    return m.astype(jnp.float32)


def _interp_taps(out_size, in_size):
    """align_corners=True two-tap indices + fractions along one axis."""
    if in_size == 1:
        z = jnp.zeros((out_size,), jnp.int32)
        return z, z, jnp.zeros((out_size,), jnp.float32)
    if out_size == 1:
        pos = jnp.zeros((1,), jnp.float32)
    else:
        pos = jnp.arange(out_size, dtype=jnp.float32) * (in_size - 1) / (out_size - 1)
    lo = jnp.clip(jnp.floor(pos), 0, in_size - 1)
    hi = jnp.clip(lo + 1, 0, in_size - 1)
    frac = pos - lo
    return lo.astype(jnp.int32), hi.astype(jnp.int32), frac.astype(jnp.float32)


def _row_block(n_rows, cap=128):
    for cand in (cap, 64, 32, 16, 8):
        if n_rows % cand == 0:
            return cand
    return n_rows


def _lane_block(lanes, cap=8192):
    if lanes <= cap or lanes % 128 != 0:
        return lanes
    for lb in range(cap, 0, -128):
        if lanes % lb == 0:
            return lb
    return lanes


def resize_bilinear(x, ho, wo):
    """F.interpolate(mode='bilinear', align_corners=True) on NHWC via two Pallas passes."""
    n, h, w, c = x.shape
    if (h, w) == (ho, wo):
        return x
    dt = x.dtype

    # --- pass 1: H interpolation as a row/lane-tiled MXU GEMM: A(Ho,H) @ x(H, W*C) ---
    A = _interp_matrix(ho, h)
    wc = w * c
    rb = _row_block(ho)
    lb = _lane_block(wc)
    t = pl.pallas_call(
        _h_interp_kernel,
        out_shape=jax.ShapeDtypeStruct((n, ho, wc), dt),
        grid_spec=pltpu.PrefetchScalarGridSpec(
            num_scalar_prefetch=0,
            grid=(n, ho // rb, wc // lb),
            in_specs=[pl.BlockSpec((rb, h), lambda i, j, l: (j, 0)),
                      pl.BlockSpec((1, h, lb), lambda i, j, l: (i, 0, l))],
            out_specs=pl.BlockSpec((1, rb, lb), lambda i, j, l: (i, j, l))),
        compiler_params=pltpu.CompilerParams(
            dimension_semantics=("parallel", "parallel", "parallel")),
    )(A, x.reshape(n, h, wc))
    t = t.reshape(n, ho, w, c)

    # --- pass 2: W interpolation = two-tap gather + lane-dense Pallas lerp ---
    # TODO(synk): the two-tap column gather is XLA-side data movement; an in-kernel
    # dynamic gather along the W axis would avoid that extra HBM copy.
    lo_i, hi_i, frac = _interp_taps(wo, w)
    t_lo = jnp.take(t, lo_i, axis=2).reshape(n, ho, wo * c)
    t_hi = jnp.take(t, hi_i, axis=2).reshape(n, ho, wo * c)
    f_flat = jnp.repeat(frac, c).reshape(1, wo * c)

    rb2 = _row_block(ho)
    lb2 = _lane_block(wo * c)
    y = pl.pallas_call(
        _lerp_lane_kernel,
        out_shape=jax.ShapeDtypeStruct((n, ho, wo * c), dt),
        grid_spec=pltpu.PrefetchScalarGridSpec(
            num_scalar_prefetch=0,
            grid=(n, ho // rb2, (wo * c) // lb2),
            in_specs=[pl.BlockSpec((1, lb2), lambda i, j, l: (0, l)),
                      pl.BlockSpec((1, rb2, lb2), lambda i, j, l: (i, j, l)),
                      pl.BlockSpec((1, rb2, lb2), lambda i, j, l: (i, j, l))],
            out_specs=pl.BlockSpec((1, rb2, lb2), lambda i, j, l: (i, j, l))),
        compiler_params=pltpu.CompilerParams(
            dimension_semantics=("parallel", "parallel", "parallel")),
    )(f_flat, t_lo, t_hi)
    return y.reshape(n, ho, wo, c)


# ----------------------------------------------------------------------------
# Parameter construction (deterministic)
# ----------------------------------------------------------------------------
def _conv_params(key, kh, kw, cin, cout, bias=True):
    kw_key, kb_key = jax.random.split(key)
    fan_in = float(kh * kw * cin)
    w = jax.random.normal(kw_key, (kh, kw, cin, cout), jnp.float32) / jnp.sqrt(fan_in)
    b = 0.01 * jax.random.normal(kb_key, (cout,), jnp.float32) if bias else None
    return w, b


class DepthFormer:
    """JAX/Pallas reimplementation of DepthFormer's forward pass."""
    min_depth = 0.01

    def __init__(self, in_channels=3, key=jax.random.PRNGKey(0)):
        self.nfeats = [32, 64]                      # DepthFormerStem out_dims
        self.swin_feats = [96, 192, 384, 768]       # SwinTransformerV2 (Swin-T) stage dims
        self.list_feats = self.nfeats + self.swin_feats

        keys = iter(jax.random.split(key, 256))
        nk = lambda: next(keys)

        # --- encode: stem (DynamicConv2d 7x7 bias=False + DownSample) ---
        self.stem_conv1 = _conv_params(nk(), 7, 7, in_channels, self.nfeats[0], bias=False)
        # TODO(synk): DownSample's exact definition is unavailable; modeled as 3x3/s2 conv+ReLU.
        self.stem_down = _conv_params(nk(), 3, 3, self.nfeats[0], self.nfeats[1], bias=True)

        # --- encode: Swin backbone stand-in ---
        # TODO(synk): SwinTransformerV2 (pretrained window attention) has no source here;
        # stand-in = strided patch-embedding convs producing the same multi-scale
        # channels/resolutions (H/4..H/32); the per-stage BN2d norm is folded directly
        # into each patch-embed conv (no nonlinearity between conv and BN).
        self.swin_convs = []
        prev = in_channels
        for i, c in enumerate(self.swin_feats):
            k = 4 if i == 0 else 2
            self.swin_convs.append((_conv_params(nk(), k, k, prev, c, bias=True), k))
            prev = c

        # --- encode: BN2d norms over transformer outputs (inference/running-stats mode) ---
        self.norms = []
        for c in self.swin_feats:
            g = 1.0 + 0.1 * jax.random.normal(nk(), (c,), jnp.float32)
            b = 0.1 * jax.random.normal(nk(), (c,), jnp.float32)
            m = 0.1 * jax.random.normal(nk(), (c,), jnp.float32)
            v = 0.5 + jnp.abs(jax.random.normal(nk(), (c,), jnp.float32))
            self.norms.append((g, b, m, v))
        # TODO(synk): HAHIHetero neck (deformable-attention feature interaction) source is
        # unavailable; with out_channels == in_channels it is treated as identity pass-through.

        # --- decode (DepthFormerDecode, norm_cfg=None, act=ReLU) ---
        rev = self.list_feats[::-1]
        self.dec_first = _conv_params(nk(), 1, 1, rev[0], rev[0], bias=True)   # 1x1, no act
        self.dec_up = []
        up_prev = rev[0]
        for c in rev[1:]:
            conv_a = _conv_params(nk(), 3, 3, c + up_prev, c, bias=True)
            conv_b = _conv_params(nk(), 3, 3, c, c, bias=True)
            self.dec_up.append((conv_a, conv_b))
            up_prev = c
        self.conv_depth = [_conv_params(nk(), 3, 3, c, 1, bias=True) for c in rev]

    # -- DepthFormerEncode.forward --
    def encode(self, x):
        outs = []
        w1, _ = self.stem_conv1
        x1 = conv2d(x, w1, None, stride=1, relu=True)              # (N,H,W,32)
        wd, bd = self.stem_down
        x2 = conv2d(x1, wd, bd, stride=2, relu=True)               # (N,H/2,W/2,64)
        outs += [x1, x2]
        f = x
        for i, ((w, b), k) in enumerate(self.swin_convs):          # stand-in Swin pyramid
            g, bb, m, v = self.norms[i]
            # norm_transformer_outputs: BN folded into the conv (single fused GEMM pass)
            f = conv2d(f, w, b, stride=k, padding=0, relu=False, bn=(g, bb, m, v, 1e-5))
            outs.append(f)
        return outs                                                 # neck == identity (TODO above)

    # -- DepthFormerDecode.forward --
    def decode(self, feats):
        rev_feats = feats[::-1]
        temp = []
        for idx, feat in enumerate(rev_feats):
            if idx == 0:
                w, b = self.dec_first
                t = conv2d(feat, w, b, stride=1, relu=False)        # 1x1 conv, no act
            else:
                skip = feat
                up = resize_bilinear(temp[idx - 1], skip.shape[1], skip.shape[2])
                cat = jnp.concatenate([up, skip], axis=-1)          # torch.cat([up, skip], dim=1)
                (wa, ba), (wb, bb) = self.dec_up[idx - 1]
                t = conv2d(cat, wa, ba, relu=True)
                t = conv2d(t, wb, bb, relu=True)
            temp.append(t)
        depths = []
        for i, t in enumerate(temp):
            w, b = self.conv_depth[i]
            depths.append(depth_head(t, w, b))                      # relu(conv_depth_i(.))
        return depths

    def __call__(self, x):
        return self.decode(self.encode(x))


# ----------------------------------------------------------------------------
if __name__ == "__main__":
    key = jax.random.PRNGKey(0)
    k_x, k_p = jax.random.split(key)

    N, C, H, W = 1, 3, 32, 32
    x_nchw = jax.random.normal(k_x, (N, C, H, W), jnp.float32)   # PyTorch NCHW convention
    x = jnp.transpose(x_nchw, (0, 2, 3, 1))                      # -> NHWC for the kernels

    model = DepthFormer(in_channels=C, key=k_p)
    depth_maps = model(x)
    depth_maps = [jax.block_until_ready(d) for d in depth_maps]

    assert len(depth_maps) == len(model.list_feats)
    assert depth_maps[-1].shape == (N, H, W, 1)          # full-resolution depth head
    assert depth_maps[0].shape == (N, H // 32, W // 32, 1)
    assert all(bool(jnp.all(d >= 0)) for d in depth_maps)         # ReLU heads
    print("KERNEL_OK")
</pallas_src>

<mosaic_0001>
module attributes {stable_mosaic.version = 11 : i64} {
  func.func @_gemm_bias_act_nok_kernel(%arg0: i32, %arg1: i32, %arg2: memref<512x147xbf16, #tpu.memory_space<vmem>>, %arg3: memref<147x32xbf16, #tpu.memory_space<vmem>>, %arg4: memref<1x32xf32, #tpu.memory_space<vmem>>, %arg5: memref<512x32xbf16, #tpu.memory_space<vmem>>) attributes {dimension_semantics = [#tpu.dimension_semantics<parallel>, #tpu.dimension_semantics<parallel>], iteration_bounds = array<i64: 2, 1>, scalar_prefetch = 0 : i64, scratch_operands = 0 : i64, tpu.core_type = #tpu.core_type<tc>, window_params = [{transform_indices = @transform_0, window_bounds = array<i64: 512, 147>}, {transform_indices = @transform_1, window_bounds = array<i64: 147, 32>}, {transform_indices = @transform_2, window_bounds = array<i64: 1, 32>}, {transform_indices = @transform_3, window_bounds = array<i64: 512, 32>}]} {
    %c0 = arith.constant 0 : index
    %c0_0 = arith.constant 0 : index
    %0 = vector.load %arg2[%c0, %c0_0] : memref<512x147xbf16, #tpu.memory_space<vmem>>, vector<512x147xbf16>
    %c0_1 = arith.constant 0 : index
    %c0_2 = arith.constant 0 : index
    %1 = vector.load %arg3[%c0_1, %c0_2] : memref<147x32xbf16, #tpu.memory_space<vmem>>, vector<147x32xbf16>
    %cst = arith.constant dense<0.000000e+00> : vector<512x32xf32>
    %2 = tpu.matmul %0, %1, %cst {dimension_numbers = #tpu.dot_dimension_numbers<[1], [0], [0], [1], [0, 0, 1, 1], [], []>} : vector<512x147xbf16>, vector<147x32xbf16>, vector<512x32xf32> -> vector<512x32xf32>
    %c0_3 = arith.constant 0 : index
    %c0_4 = arith.constant 0 : index
    %3 = vector.load %arg4[%c0_3, %c0_4] : memref<1x32xf32, #tpu.memory_space<vmem>>, vector<1x32xf32>
    %4 = vector.broadcast %3 : vector<1x32xf32> to vector<512x32xf32>
    %5 = arith.addf %2, %4 : vector<512x32xf32>
    %cst_5 = arith.constant 0.000000e+00 : f32
    %6 = vector.broadcast %cst_5 : f32 to vector<512x32xf32>
    %7 = arith.maximumf %5, %6 : vector<512x32xf32>
    %8 = arith.truncf %7 : vector<512x32xf32> to vector<512x32xbf16>
    %c0_6 = arith.constant 0 : index
    %c0_7 = arith.constant 0 : index
    %9 = vector.load %arg5[%c0_6, %c0_7] : memref<512x32xbf16, #tpu.memory_space<vmem>>, vector<512x32xbf16>
    tpu.vector_store %arg5[%c0_6, %c0_7], %8 {strides = array<i32>} : memref<512x32xbf16, #tpu.memory_space<vmem>>, vector<512x32xbf16>,
    return
  }
  func.func @transform_0(%arg0: i32, %arg1: i32) -> (i32, i32) {
    %c0_i32 = arith.constant 0 : i32
    %c0_i32_0 = arith.constant 0 : i32
    return %arg0, %c0_i32 : i32, i32
  }
  func.func @transform_1(%arg0: i32, %arg1: i32) -> (i32, i32) {
    %c0_i32 = arith.constant 0 : i32
    %c0_i32_0 = arith.constant 0 : i32
    return %c0_i32, %arg1 : i32, i32
  }
  func.func @transform_2(%arg0: i32, %arg1: i32) -> (i32, i32) {
    %c0_i32 = arith.constant 0 : i32
    %c0_i32_0 = arith.constant 0 : i32
    return %c0_i32, %arg1 : i32, i32
  }
  func.func @transform_3(%arg0: i32, %arg1: i32) -> (i32, i32) {
    %c0_i32 = arith.constant 0 : i32
    return %arg0, %arg1 : i32, i32
  }
}

</mosaic_0001>

<bundles_post_ra>
// kernel: tpu_custom_call.1
= control target key start
LH: loop header
LB: loop body
LE: loop exit
PB: predicated region body
PF: predicated region fallthrough
CT: control target
= control target key end

     0   :  { %s1992_s12 = smov 0   ;;  %s1994_s13 = smov 0   ;;  %s2356_s0 = inlined_call_operand.vmem [shape: bf16[1024,147], index: 0, kind: input, shape index: {}]   ;;  %s2357_s1 = inlined_call_operand.vmem [shape: bf16[147,32], index: 1, kind: input, shape index: {}]   ;;  %s2358_s2 = inlined_call_operand.vmem [shape: f32[1,32], index: 2, kind: input, shape index: {}]   ;;  %s2359_s3 = inlined_call_operand.vmem [shape: bf16[1024,32], index: 3, kind: output, shape index: {}]  }
   0x1   :  { %s1996_s14 = smov 0  }
   0x2 LB: > { %s25_s15 = sadd.s32 1, %s1964_s13  ;;  %p1550_p0 = scmp.ge.s32.totalorder %s1968_s14, 1  ;;  %s1968_s14 = sphi %s1996_s14, %s13_s14   ;;  %s1964_s13 = sphi %s1994_s13, %s2361_s13   ;;  %s1960_s12 = sphi %s1992_s12, %s2360_s12  }
   0x3   : > { %p27_p1 = scmp.ge.s32.totalorder %s25_s15, 2  ;;  %p170_p2 = scmp.lt.s32.totalorder %s1968_s14, 3 }
   0x5   : > { %s2363_s15 = smov (%p27_p1, %s25_s15), 0  ;;  %p171_p3 = pnand %p1550_p0, %p170_p2 }
   0x6   : > { %s1551_s22 = sshll.u32 (!%p171_p3), %s1960_s12, 6 }
   0x7   : > { %174 = sbr.rel (%p171_p3) target bundleno = 377 (0x179), region = 32  ;;  %p206_p4 = scmp.lt.s32.totalorder (!%p171_p3), %s1551_s22, 127 }
   0xc   : > { %v1840_v0 = vld [vmem:[%s2357_s1 + $0x38] sm:$0xff]   ;;  %v1970_v1 = vmov 0   ;;  %v1841_v2 = vld [vmem:[%s2357_s1 + $0x30] sm:$0xff]   ;;  %v1842_v3 = vld [vmem:[%s2357_s1 + $0x28] sm:$0xff]   ;;  %s2365_s22 = smov (!%p206_p4, %s1551_s22), 127  ;;  %vm664_vm0 = vcmask 154624  }
   0xd   : > { %768 = vmatprep.subr.bf16.mxu0 %v1970_v1  ;;  %1794 = vmatprep.subr.bf16.mxu1 %v1970_v1  ;;  %v1843_v4 = vld [vmem:[%s2357_s1 + $0x20] sm:$0xff]   ;;  %s1729_s25 = sshll.u32 %s2365_s22, 3  ;;  %v1844_v5 = vld [vmem:[%s2357_s1 + $0x18] sm:$0xff]   ;;  %v1845_v8 = vld [vmem:[%s2357_s1 + $0x10] sm:$0xff]   ;;  %vm761_vm1 = vcmask 1040384   ;;  %vm762_vm2 = vcmask 1041408  }
   0xe   : > { %769 = vmatpush1.bf16.msra.mxu0 %v1840_v0  ;;  %1804 = vmatpush1.bf16.msra.mxu1 %v1840_v0  ;;  %s2028_s28 = scalar_lea.vmem %s2356_s0, %s1729_s25  ;;  %v1846_v9 = vld [vmem:[%s2357_s1 + $0x8] sm:$0xff]   ;;  %v1971_v10 = vmov 65535   ;;  %v1847_v12 = vld [vmem:[%s2357_s1] sm:$0xff]   ;;  %s1555_s19 = sshll.u32 %s2365_s22, 2  ;;  %vm1377_vm3 = vcmask 257024  }
   0xf   : > { %770 = vmatprep.subr.bf16.mxu0 %v1970_v1  ;;  %1795 = vmatprep.subr.bf16.mxu1 %v1970_v1  ;;  %v1852_v6 = vld [vmem:[%s2028_s28 + $0x4] ss:$8 sps:$4 sm:$0xff]   ;;  %v763_v11 = vsel %vm761_vm1, 4294967295, %v1971_v10  ;;  %v1848_v13 = vld [vmem:[%s2357_s1 + $0x48] ss:$0 sps:$4 sm:$0x33]   ;;  %s2155_s23 = scalar_lea.vmem %s2359_s3, %s1555_s19 }
  0x10   : > { %v1855_v7 = vld [vmem:[%s2028_s28 + $0x104] ss:$8 sps:$4 sm:$0xff]   ;;  %1631 = vmatprep.mubr.msk.bf16.mxu0 %vm664_vm0, %v1852_v6  ;;  %v764_v14 = vsel %vm762_vm2, %v763_v11, 0  ;;  %v1850_v17 = vld [vmem:[%s2028_s28] ss:$8 sps:$4 sm:$0xff]  }
  0x11   : > { %1647 = vmatprep.mubr.msk.bf16.mxu1 %vm664_vm0, %v1855_v7  ;;  %v766_v15 = vand.u32 %v1848_v13, %v764_v14  ;;  %v1849_v16 = vld [vmem:[%s2357_s1 + $0x40] sm:$0xff]   ;;  %v1856_v19 = vld [vmem:[%s2028_s28 + $0x14] ss:$8 sps:$4 sm:$0xff]   ;;  %v1860_v21 = vld [vmem:[%s2028_s28 + $0x10] ss:$8 sps:$4 sm:$0xff]  }
  0x12   : > { %771 = vmatpush1.bf16.msra.mxu0 %v1841_v2  ;;  %1805 = vmatpush1.bf16.msra.mxu1 %v1841_v2  ;;  %v1853_v18 = vld [vmem:[%s2028_s28 + $0x100] ss:$8 sps:$4 sm:$0xff]   ;;  %v1858_v20 = vld [vmem:[%s2028_s28 + $0x114] ss:$8 sps:$4 sm:$0xff]   ;;  %v1861_v22 = vld [vmem:[%s2028_s28 + $0x110] ss:$8 sps:$4 sm:$0xff]  }
  0x13   : > { %772 = vmatprep.subr.bf16.mxu0 %v1970_v1  ;;  %1796 = vmatprep.subr.bf16.mxu1 %v1970_v1  ;;  %v1862_v23 = vld [vmem:[%s2028_s28 + $0x24] ss:$8 sps:$4 sm:$0xff]   ;;  %v1866_v25 = vld [vmem:[%s2028_s28 + $0x20] ss:$8 sps:$4 sm:$0xff]   ;;  %v1868_v27 = vld [vmem:[%s2028_s28 + $0x34] ss:$8 sps:$4 sm:$0xff]  }
  0x14   : > { %v1864_v24 = vld [vmem:[%s2028_s28 + $0x124] ss:$8 sps:$4 sm:$0xff]   ;;  %v1867_v26 = vld [vmem:[%s2028_s28 + $0x120] ss:$8 sps:$4 sm:$0xff]   ;;  %v1870_v28 = vld [vmem:[%s2028_s28 + $0x134] ss:$8 sps:$4 sm:$0xff]  }
  0x15   : > { %v1872_v29 = vld [vmem:[%s2028_s28 + $0x30] ss:$8 sps:$4 sm:$0xff]   ;;  %v1874_v31 = vld [vmem:[%s2028_s28 + $0x44] ss:$8 sps:$4 sm:$0xff]   ;;  %v1878_v33 = vld [vmem:[%s2028_s28 + $0x40] ss:$8 sps:$4 sm:$0xff]  }
  0x16   : > { %773 = vmatpush1.bf16.msra.mxu0 %v1842_v3  ;;  %1806 = vmatpush1.bf16.msra.mxu1 %v1842_v3  ;;  %v1873_v30 = vld [vmem:[%s2028_s28 + $0x130] ss:$8 sps:$4 sm:$0xff]   ;;  %v1876_v32 = vld [vmem:[%s2028_s28 + $0x144] ss:$8 sps:$4 sm:$0xff]   ;;  %v1879_v34 = vld [vmem:[%s2028_s28 + $0x140] ss:$8 sps:$4 sm:$0xff]  }
  0x17   : > { %774 = vmatprep.subr.bf16.mxu0 %v1970_v1  ;;  %1797 = vmatprep.subr.bf16.mxu1 %v1970_v1  ;;  %v1880_v35 = vld [vmem:[%s2028_s28 + $0x54] ss:$8 sps:$4 sm:$0xff]   ;;  %v1884_v37 = vld [vmem:[%s2028_s28 + $0x50] ss:$8 sps:$4 sm:$0xff]   ;;  %v1886_v39 = vld [vmem:[%s2028_s28 + $0x64] ss:$8 sps:$4 sm:$0xff]  }
  0x18   : > { %v1882_v36 = vld [vmem:[%s2028_s28 + $0x154] ss:$8 sps:$4 sm:$0xff]   ;;  %v1885_v38 = vld [vmem:[%s2028_s28 + $0x150] ss:$8 sps:$4 sm:$0xff]   ;;  %v1888_v40 = vld [vmem:[%s2028_s28 + $0x164] ss:$8 sps:$4 sm:$0xff]  }
  0x19   : > { %v1890_v41 = vld [vmem:[%s2028_s28 + $0x60] ss:$8 sps:$4 sm:$0xff]   ;;  %v1892_v43 = vld [vmem:[%s2028_s28 + $0x74] ss:$8 sps:$4 sm:$0xff]   ;;  %v1896_v45 = vld [vmem:[%s2028_s28 + $0x70] ss:$8 sps:$4 sm:$0xff]  }
  0x1a   : > { %775 = vmatpush1.bf16.msra.mxu0 %v1843_v4  ;;  %1807 = vmatpush1.bf16.msra.mxu1 %v1843_v4  ;;  %v1891_v42 = vld [vmem:[%s2028_s28 + $0x160] ss:$8 sps:$4 sm:$0xff]   ;;  %v1894_v44 = vld [vmem:[%s2028_s28 + $0x174] ss:$8 sps:$4 sm:$0xff]   ;;  %v1897_v46 = vld [vmem:[%s2028_s28 + $0x170] ss:$8 sps:$4 sm:$0xff]  }
  0x1b   : > { %776 = vmatprep.subr.bf16.mxu0 %v1970_v1  ;;  %1798 = vmatprep.subr.bf16.mxu1 %v1970_v1  ;;  %v1898_v47 = vld [vmem:[%s2028_s28 + $0x84] ss:$8 sps:$4 sm:$0xff]   ;;  %v1902_v49 = vld [vmem:[%s2028_s28 + $0x80] ss:$8 sps:$4 sm:$0xff]   ;;  %v1904_v51 = vld [vmem:[%s2028_s28 + $0x94] ss:$8 sps:$4 sm:$0xff]  }
  0x1c   : > { %v1900_v48 = vld [vmem:[%s2028_s28 + $0x184] ss:$8 sps:$4 sm:$0xff]   ;;  %v1903_v50 = vld [vmem:[%s2028_s28 + $0x180] ss:$8 sps:$4 sm:$0xff]   ;;  %v1906_v52 = vld [vmem:[%s2028_s28 + $0x194] ss:$8 sps:$4 sm:$0xff]  }
  0x1d   : > { %v1908_v53 = vld [vmem:[%s2028_s28 + $0x90] ss:$8 sps:$4 sm:$0xff]   ;;  %v1910_v55 = vld [vmem:[%s2028_s28 + $0xa4] ss:$8 sps:$4 sm:$0xff]   ;;  %v1914_v57 = vld [vmem:[%s2028_s28 + $0xa0] ss:$8 sps:$4 sm:$0xff]  }
  0x1e   : > { %777 = vmatpush1.bf16.msra.mxu0 %v1844_v5  ;;  %1808 = vmatpush1.bf16.msra.mxu1 %v1844_v5  ;;  %v1909_v54 = vld [vmem:[%s2028_s28 + $0x190] ss:$8 sps:$4 sm:$0xff]   ;;  %v1912_v56 = vld [vmem:[%s2028_s28 + $0x1a4] ss:$8 sps:$4 sm:$0xff]   ;;  %v1915_v58 = vld [vmem:[%s2028_s28 + $0x1a0] ss:$8 sps:$4 sm:$0xff]  }
  0x1f   : > { %778 = vmatprep.subr.bf16.mxu0 %v1970_v1  ;;  %1799 = vmatprep.subr.bf16.mxu1 %v1970_v1  ;;  %v1916_v59 = vld [vmem:[%s2028_s28 + $0xb4] ss:$8 sps:$4 sm:$0xff]   ;;  %v1920_v61 = vld [vmem:[%s2028_s28 + $0xb0] ss:$8 sps:$4 sm:$0xff]   ;;  %v1922_v63 = vld [vmem:[%s2028_s28 + $0xc4] ss:$8 sps:$4 sm:$0xff]  }
  0x20   : > { %v1918_v60 = vld [vmem:[%s2028_s28 + $0x1b4] ss:$8 sps:$4 sm:$0xff]   ;;  %v1921_v62 = vld [vmem:[%s2028_s28 + $0x1b0] ss:$8 sps:$4 sm:$0xff]   ;;  %v1924_v0 = vld [vmem:[%s2028_s28 + $0x1c4] ss:$8 sps:$4 sm:$0xff]  }
  0x21   : > { %v1927_v2 = vld [vmem:[%s2028_s28 + $0x1c0] ss:$8 sps:$4 sm:$0xff]   ;;  %v1928_v3 = vld [vmem:[%s2028_s28 + $0xd4] ss:$8 sps:$4 sm:$0xff]   ;;  %v1932_v5 = vld [vmem:[%s2028_s28 + $0xd0] ss:$8 sps:$4 sm:$0xff]  }
  0x22   : > { %779 = vmatpush1.bf16.msra.mxu0 %v1845_v8  ;;  %1809 = vmatpush1.bf16.msra.mxu1 %v1845_v8  ;;  %v1930_v4 = vld [vmem:[%s2028_s28 + $0x1d4] ss:$8 sps:$4 sm:$0xff]   ;;  %v1933_v6 = vld [vmem:[%s2028_s28 + $0x1d0] ss:$8 sps:$4 sm:$0xff]   ;;  %v1934_v7 = vld [vmem:[%s2028_s28 + $0xe4] ss:$8 sps:$4 sm:$0xff]  }
  0x23   : > { %780 = vmatprep.subr.bf16.mxu0 %v1970_v1  ;;  %1800 = vmatprep.subr.bf16.mxu1 %v1970_v1  ;;  %v1936_v8 = vld [vmem:[%s2028_s28 + $0x1e4] ss:$8 sps:$4 sm:$0xff]   ;;  %v1939_v10 = vld [vmem:[%s2028_s28 + $0x1e0] ss:$8 sps:$4 sm:$0xff]   ;;  %v1940_v11 = vld [vmem:[%s2028_s28 + $0xf4] ss:$8 sps:$4 sm:$0xff]  }
  0x24   : > { %v1944_v13 = vld [vmem:[%s2028_s28 + $0xf0] ss:$8 sps:$4 sm:$0xff]  }
  0x25   : > { %v1945_v14 = vld [vmem:[%s2028_s28 + $0x1f0] ss:$8 sps:$4 sm:$0xff]  }
  0x26   : > { %781 = vmatpush1.bf16.msra.mxu0 %v1846_v9  ;;  %1810 = vmatpush1.bf16.msra.mxu1 %v1846_v9  ;;  %v1938_v9 = vld [vmem:[%s2028_s28 + $0xe0] ss:$8 sps:$4 sm:$0xff]  }
  0x27   : > { %782 = vmatprep.subr.bf16.mxu0 %v1970_v1  ;;  %1801 = vmatprep.subr.bf16.mxu1 %v1970_v1 }
  0x2a   : > { %783 = vmatpush1.bf16.msra.mxu0 %v1847_v12  ;;  %1811 = vmatpush1.bf16.msra.mxu1 %v1847_v12  ;;  %v1942_v12 = vld [vmem:[%s2028_s28 + $0x1f4] ss:$8 sps:$4 sm:$0xff]  }
  0x2b   : > { %796 = vmatprep.subr.bf16.mxu0 %v1970_v1  ;;  %1802 = vmatprep.subr.bf16.mxu1 %v1970_v1 }
  0x2e   : > { %797 = vmatpush2.bf16.msra.mxu0 %v766_v15  ;;  %1812 = vmatpush2.bf16.msra.mxu1 %v766_v15  ;;  %v2147_v15 = vld [vmem:[%s2358_s2] ss:$0 sm:$0xff] }
  0x2f   : > { %798 = vmatprep.subr.bf16.mxu0 %v1970_v1  ;;  %1803 = vmatprep.subr.bf16.mxu1 %v1970_v1  ;;  %v1926_v1 = vld [vmem:[%s2028_s28 + $0xc0] ss:$8 sps:$4 sm:$0xff]  }
  0x32   : > { %799 = vmatpush2.bf16.msra.mxu0 %v1849_v16  ;;  %1813 = vmatpush2.bf16.msra.mxu1 %v1849_v16 }
  0x35   : > { %801 = vmatmul.mubr.bf16.vlgmr.msra.gmra.mxu0 %v1850_v17  ;;  %929 = vmatmul.mubr.bf16.vlgmr.msra.gmra.mxu1 %v1853_v18 }
  0x36   : > { %1632 = vmatprep.mubr.msk.bf16.mxu0 %vm664_vm0, %v1856_v19  ;;  %1648 = vmatprep.mubr.msk.bf16.mxu1 %vm664_vm0, %v1858_v20 }
  0x3d   : > { %809 = vmatmul.mubr.bf16.gmra.mxu0 %v1860_v21  ;;  %937 = vmatmul.mubr.bf16.gmra.mxu1 %v1861_v22 }
  0x3e   : > { %1633 = vmatprep.mubr.msk.bf16.mxu0 %vm664_vm0, %v1862_v23  ;;  %1649 = vmatprep.mubr.msk.bf16.mxu1 %vm664_vm0, %v1864_v24 }
  0x45   : > { %817 = vmatmul.mubr.bf16.gmra.mxu0 %v1866_v25  ;;  %945 = vmatmul.mubr.bf16.gmra.mxu1 %v1867_v26 }
  0x46   : > { %1634 = vmatprep.mubr.msk.bf16.mxu0 %vm664_vm0, %v1868_v27  ;;  %1650 = vmatprep.mubr.msk.bf16.mxu1 %vm664_vm0, %v1870_v28 }
  0x4d   : > { %825 = vmatmul.mubr.bf16.gmra.mxu0 %v1872_v29  ;;  %953 = vmatmul.mubr.bf16.gmra.mxu1 %v1873_v30 }
  0x4e   : > { %1635 = vmatprep.mubr.msk.bf16.mxu0 %vm664_vm0, %v1874_v31  ;;  %1651 = vmatprep.mubr.msk.bf16.mxu1 %vm664_vm0, %v1876_v32 }
  0x55   : > { %833 = vmatmul.mubr.bf16.gmra.mxu0 %v1878_v33  ;;  %961 = vmatmul.mubr.bf16.gmra.mxu1 %v1879_v34 }
  0x56   : > { %1636 = vmatprep.mubr.msk.bf16.mxu0 %vm664_vm0, %v1880_v35  ;;  %1652 = vmatprep.mubr.msk.bf16.mxu1 %vm664_vm0, %v1882_v36 }
  0x5d   : > { %841 = vmatmul.mubr.bf16.gmra.mxu0 %v1884_v37  ;;  %969 = vmatmul.mubr.bf16.gmra.mxu1 %v1885_v38 }
  0x5e   : > { %1637 = vmatprep.mubr.msk.bf16.mxu0 %vm664_vm0, %v1886_v39  ;;  %1653 = vmatprep.mubr.msk.bf16.mxu1 %vm664_vm0, %v1888_v40 }
  0x65   : > { %849 = vmatmul.mubr.bf16.gmra.mxu0 %v1890_v41  ;;  %977 = vmatmul.mubr.bf16.gmra.mxu1 %v1891_v42 }
  0x66   : > { %1638 = vmatprep.mubr.msk.bf16.mxu0 %vm664_vm0, %v1892_v43  ;;  %1654 = vmatprep.mubr.msk.bf16.mxu1 %vm664_vm0, %v1894_v44 }
  0x6d   : > { %857 = vmatmul.mubr.bf16.gmra.mxu0 %v1896_v45  ;;  %985 = vmatmul.mubr.bf16.gmra.mxu1 %v1897_v46 }
  0x6e   : > { %1639 = vmatprep.mubr.msk.bf16.mxu0 %vm664_vm0, %v1898_v47  ;;  %1655 = vmatprep.mubr.msk.bf16.mxu1 %vm664_vm0, %v1900_v48 }
  0x75   : > { %865 = vmatmul.mubr.bf16.gmra.mxu0 %v1902_v49  ;;  %993 = vmatmul.mubr.bf16.gmra.mxu1 %v1903_v50 }
  0x76   : > { %1640 = vmatprep.mubr.msk.bf16.mxu0 %vm664_vm0, %v1904_v51  ;;  %1656 = vmatprep.mubr.msk.bf16.mxu1 %vm664_vm0, %v1906_v52 }
  0x7d   : > { %873 = vmatmul.mubr.bf16.gmra.mxu0 %v1908_v53  ;;  %1001 = vmatmul.mubr.bf16.gmra.mxu1 %v1909_v54 }
  0x7e   : > { %1641 = vmatprep.mubr.msk.bf16.mxu0 %vm664_vm0, %v1910_v55  ;;  %1657 = vmatprep.mubr.msk.bf16.mxu1 %vm664_vm0, %v1912_v56 }
  0x85   : > { %881 = vmatmul.mubr.bf16.gmra.mxu0 %v1914_v57  ;;  %1009 = vmatmul.mubr.bf16.gmra.mxu1 %v1915_v58 }
  0x86   : > { %1642 = vmatprep.mubr.msk.bf16.mxu0 %vm664_vm0, %v1916_v59  ;;  %1658 = vmatprep.mubr.msk.bf16.mxu1 %vm664_vm0, %v1918_v60 }
  0x8d   : > { %889 = vmatmul.mubr.bf16.gmra.mxu0 %v1920_v61  ;;  %1017 = vmatmul.mubr.bf16.gmra.mxu1 %v1921_v62 }
  0x8e   : > { %1643 = vmatprep.mubr.msk.bf16.mxu0 %vm664_vm0, %v1922_v63  ;;  %1659 = vmatprep.mubr.msk.bf16.mxu1 %vm664_vm0, %v1924_v0 }
  0x95   : > { %897 = vmatmul.mubr.bf16.gmra.mxu0 %v1926_v1  ;;  %1025 = vmatmul.mubr.bf16.gmra.mxu1 %v1927_v2 }
  0x96   : > { %1644 = vmatprep.mubr.msk.bf16.mxu0 %vm664_vm0, %v1928_v3  ;;  %1660 = vmatprep.mubr.msk.bf16.mxu1 %vm664_vm0, %v1930_v4 }
  0x9d   : > { %905 = vmatmul.mubr.bf16.gmra.mxu0 %v1932_v5  ;;  %1033 = vmatmul.mubr.bf16.gmra.mxu1 %v1933_v6 }
  0x9e   : > { %1645 = vmatprep.mubr.msk.bf16.mxu0 %vm664_vm0, %v1934_v7  ;;  %1661 = vmatprep.mubr.msk.bf16.mxu1 %vm664_vm0, %v1936_v8 }
  0xa5   : > { %913 = vmatmul.mubr.bf16.gmra.mxu0 %v1938_v9  ;;  %1041 = vmatmul.mubr.bf16.gmra.mxu1 %v1939_v10 }
  0xa6   : > { %1646 = vmatprep.mubr.msk.bf16.mxu0 %vm664_vm0, %v1940_v11  ;;  %1662 = vmatprep.mubr.msk.bf16.mxu1 %vm664_vm0, %v1942_v12 }
  0xad   : > { %921 = vmatmul.mubr.bf16.gmra.mxu0 %v1944_v13  ;;  %1049 = vmatmul.mubr.bf16.gmra.mxu1 %v1945_v14 }
  0xf5   : > { %v802_v16 = vpop.f32.mrf.mxu0  ;;  %v930_v17 = vpop.f32.mrf.mxu1 }
  0xf6   : > { %v803_v18 = vadd.f32 %v2147_v15, %v802_v16  ;;  %v931_v19 = vadd.f32 %v2147_v15, %v930_v17 }
  0xf7   : > { %v804_v20 = vpop.f32.mrf.mxu0  ;;  %v932_v21 = vpop.f32.mrf.mxu1 }
  0xf8   : > { %v1057_v22 = vmax.f32 %v803_v18, 0.0  ;;  %v1089_v23 = vmax.f32 %v931_v19, 0.0 }
  0xf9   : > { %v805_v24 = vpop.f32.mrf.mxu0  ;;  %v933_v25 = vpop.f32.mrf.mxu1 }
  0xfa   : > { %v1730_v26 = vpack.c.bf16 %v1057_v22, %v1057_v22  ;;  %v1762_v27 = vpack.c.bf16 %v1089_v23, %v1089_v23  ;;  %v806_v28 = vadd.f32 %v2147_v15, %v805_v24  ;;  %v934_v29 = vadd.f32 %v2147_v15, %v933_v25 }
  0xfb   : > { %v807_v30 = vpop.f32.mrf.mxu0  ;;  %v935_v31 = vpop.f32.mrf.mxu1 }
  0xfc   : > { %1378 = vst.msk [vmem:[%s2155_s23] sm:$0xf] %vm1377_vm3, %v1730_v26  ;;  %1410 = vst.msk [vmem:[%s2155_s23 + $0x80] sm:$0xf] %vm1377_vm3, %v1762_v27  ;;  %v1058_v32 = vmax.f32 %v806_v28, 0.0  ;;  %v1090_v33 = vmax.f32 %v934_v29, 0.0 }
  0xfd   : > { %v810_v34 = vpop.f32.mrf.mxu0  ;;  %v938_v35 = vpop.f32.mrf.mxu1 }
  0xfe   : > { %v1731_v36 = vpack.c.bf16 %v1058_v32, %v1058_v32  ;;  %v1763_v37 = vpack.c.bf16 %v1090_v33, %v1090_v33  ;;  %v811_v38 = vadd.f32 %v2147_v15, %v810_v34  ;;  %v939_v39 = vadd.f32 %v2147_v15, %v938_v35 }
  0xff   : > { %v812_v40 = vpop.f32.mrf.mxu0  ;;  %v940_v41 = vpop.f32.mrf.mxu1 }
 0x100   : > { %1379 = vst.msk [vmem:[%s2155_s23 + $0x4] sm:$0xf] %vm1377_vm3, %v1731_v36  ;;  %1411 = vst.msk [vmem:[%s2155_s23 + $0x84] sm:$0xf] %vm1377_vm3, %v1763_v37  ;;  %v1059_v42 = vmax.f32 %v811_v38, 0.0  ;;  %v1091_v43 = vmax.f32 %v939_v39, 0.0 }
 0x101   : > { %v813_v44 = vpop.f32.mrf.mxu0  ;;  %v941_v45 = vpop.f32.mrf.mxu1 }
 0x102   : > { %v1732_v46 = vpack.c.bf16 %v1059_v42, %v1059_v42  ;;  %v1764_v47 = vpack.c.bf16 %v1091_v43, %v1091_v43  ;;  %v814_v48 = vadd.f32 %v2147_v15, %v813_v44  ;;  %v942_v49 = vadd.f32 %v2147_v15, %v941_v45 }
 0x103   : > { %v815_v50 = vpop.f32.mrf.mxu0  ;;  %v943_v51 = vpop.f32.mrf.mxu1 }
 0x104   : > { %1380 = vst.msk [vmem:[%s2155_s23 + $0x8] sm:$0xf] %vm1377_vm3, %v1732_v46  ;;  %1412 = vst.msk [vmem:[%s2155_s23 + $0x88] sm:$0xf] %vm1377_vm3, %v1764_v47  ;;  %v1060_v52 = vmax.f32 %v814_v48, 0.0  ;;  %v1092_v53 = vmax.f32 %v942_v49, 0.0 }
 0x105   : > { %v818_v54 = vpop.f32.mrf.mxu0  ;;  %v946_v55 = vpop.f32.mrf.mxu1 }
 0x106   : > { %v1733_v56 = vpack.c.bf16 %v1060_v52, %v1060_v52  ;;  %v1765_v57 = vpack.c.bf16 %v1092_v53, %v1092_v53  ;;  %v819_v58 = vadd.f32 %v2147_v15, %v818_v54  ;;  %v947_v59 = vadd.f32 %v2147_v15, %v946_v55 }
 0x107   : > { %v820_v60 = vpop.f32.mrf.mxu0  ;;  %v948_v61 = vpop.f32.mrf.mxu1 }
 0x108   : > { %1381 = vst.msk [vmem:[%s2155_s23 + $0xc] sm:$0xf] %vm1377_vm3, %v1733_v56  ;;  %1413 = vst.msk [vmem:[%s2155_s23 + $0x8c] sm:$0xf] %vm1377_vm3, %v1765_v57  ;;  %v1061_v62 = vmax.f32 %v819_v58, 0.0  ;;  %v1093_v63 = vmax.f32 %v947_v59, 0.0 }
 0x109   : > { %v821_v0 = vpop.f32.mrf.mxu0  ;;  %v949_v1 = vpop.f32.mrf.mxu1 }
 0x10a   : > { %v1734_v2 = vpack.c.bf16 %v1061_v62, %v1061_v62  ;;  %v1766_v3 = vpack.c.bf16 %v1093_v63, %v1093_v63  ;;  %v822_v4 = vadd.f32 %v2147_v15, %v821_v0  ;;  %v950_v5 = vadd.f32 %v2147_v15, %v949_v1 }
 0x10b   : > { %v823_v6 = vpop.f32.mrf.mxu0  ;;  %v951_v7 = vpop.f32.mrf.mxu1 }
 0x10c   : > { %1382 = vst.msk [vmem:[%s2155_s23 + $0x10] sm:$0xf] %vm1377_vm3, %v1734_v2  ;;  %1414 = vst.msk [vmem:[%s2155_s23 + $0x90] sm:$0xf] %vm1377_vm3, %v1766_v3  ;;  %v1062_v8 = vmax.f32 %v822_v4, 0.0  ;;  %v1094_v9 = vmax.f32 %v950_v5, 0.0 }
 0x10d   : > { %v826_v10 = vpop.f32.mrf.mxu0  ;;  %v954_v11 = vpop.f32.mrf.mxu1 }
 0x10e   : > { %v1735_v12 = vpack.c.bf16 %v1062_v8, %v1062_v8  ;;  %v1767_v13 = vpack.c.bf16 %v1094_v9, %v1094_v9  ;;  %v827_v14 = vadd.f32 %v2147_v15, %v826_v10  ;;  %v955_v16 = vadd.f32 %v2147_v15, %v954_v11 }
 0x10f   : > { %v828_v17 = vpop.f32.mrf.mxu0  ;;  %v956_v18 = vpop.f32.mrf.mxu1 }
 0x110   : > { %1383 = vst.msk [vmem:[%s2155_s23 + $0x14] sm:$0xf] %vm1377_vm3, %v1735_v12  ;;  %1415 = vst.msk [vmem:[%s2155_s23 + $0x94] sm:$0xf] %vm1377_vm3, %v1767_v13  ;;  %v1063_v19 = vmax.f32 %v827_v14, 0.0  ;;  %v1095_v20 = vmax.f32 %v955_v16, 0.0 }
 0x111   : > { %v829_v21 = vpop.f32.mrf.mxu0  ;;  %v957_v22 = vpop.f32.mrf.mxu1 }
 0x112   : > { %v1736_v23 = vpack.c.bf16 %v1063_v19, %v1063_v19  ;;  %v1768_v24 = vpack.c.bf16 %v1095_v20, %v1095_v20  ;;  %v830_v25 = vadd.f32 %v2147_v15, %v829_v21  ;;  %v958_v26 = vadd.f32 %v2147_v15, %v957_v22 }
 0x113   : > { %v831_v27 = vpop.f32.mrf.mxu0  ;;  %v959_v28 = vpop.f32.mrf.mxu1 }
 0x114   : > { %1384 = vst.msk [vmem:[%s2155_s23 + $0x18] sm:$0xf] %vm1377_vm3, %v1736_v23  ;;  %1416 = vst.msk [vmem:[%s2155_s23 + $0x98] sm:$0xf] %vm1377_vm3, %v1768_v24  ;;  %v1064_v29 = vmax.f32 %v830_v25, 0.0  ;;  %v1096_v30 = vmax.f32 %v958_v26, 0.0 }
 0x115   : > { %v834_v31 = vpop.f32.mrf.mxu0  ;;  %v962_v32 = vpop.f32.mrf.mxu1 }
 0x116   : > { %v1737_v33 = vpack.c.bf16 %v1064_v29, %v1064_v29  ;;  %v1769_v34 = vpack.c.bf16 %v1096_v30, %v1096_v30  ;;  %v835_v35 = vadd.f32 %v2147_v15, %v834_v31  ;;  %v963_v36 = vadd.f32 %v2147_v15, %v962_v32 }
 0x117   : > { %v836_v37 = vpop.f32.mrf.mxu0  ;;  %v964_v38 = vpop.f32.mrf.mxu1 }
 0x118   : > { %1385 = vst.msk [vmem:[%s2155_s23 + $0x1c] sm:$0xf] %vm1377_vm3, %v1737_v33  ;;  %1417 = vst.msk [vmem:[%s2155_s23 + $0x9c] sm:$0xf] %vm1377_vm3, %v1769_v34  ;;  %v1065_v39 = vmax.f32 %v835_v35, 0.0  ;;  %v1097_v40 = vmax.f32 %v963_v36, 0.0 }
 0x119   : > { %v837_v41 = vpop.f32.mrf.mxu0  ;;  %v965_v42 = vpop.f32.mrf.mxu1 }
 0x11a   : > { %v1738_v43 = vpack.c.bf16 %v1065_v39, %v1065_v39  ;;  %v1770_v44 = vpack.c.bf16 %v1097_v40, %v1097_v40  ;;  %v838_v45 = vadd.f32 %v2147_v15, %v837_v41  ;;  %v966_v46 = vadd.f32 %v2147_v15, %v965_v42 }
 0x11b   : > { %v839_v47 = vpop.f32.mrf.mxu0  ;;  %v967_v48 = vpop.f32.mrf.mxu1 }
 0x11c   : > { %1386 = vst.msk [vmem:[%s2155_s23 + $0x20] sm:$0xf] %vm1377_vm3, %v1738_v43  ;;  %1418 = vst.msk [vmem:[%s2155_s23 + $0xa0] sm:$0xf] %vm1377_vm3, %v1770_v44  ;;  %v1066_v49 = vmax.f32 %v838_v45, 0.0  ;;  %v1098_v50 = vmax.f32 %v966_v46, 0.0 }
 0x11d   : > { %v842_v51 = vpop.f32.mrf.mxu0  ;;  %v970_v52 = vpop.f32.mrf.mxu1 }
 0x11e   : > { %v1739_v53 = vpack.c.bf16 %v1066_v49, %v1066_v49  ;;  %v1771_v54 = vpack.c.bf16 %v1098_v50, %v1098_v50  ;;  %v843_v55 = vadd.f32 %v2147_v15, %v842_v51  ;;  %v971_v56 = vadd.f32 %v2147_v15, %v970_v52 }
 0x11f   : > { %v844_v57 = vpop.f32.mrf.mxu0  ;;  %v972_v58 = vpop.f32.mrf.mxu1 }
 0x120   : > { %1387 = vst.msk [vmem:[%s2155_s23 + $0x24] sm:$0xf] %vm1377_vm3, %v1739_v53  ;;  %1419 = vst.msk [vmem:[%s2155_s23 + $0xa4] sm:$0xf] %vm1377_vm3, %v1771_v54  ;;  %v1067_v59 = vmax.f32 %v843_v55, 0.0  ;;  %v1099_v60 = vmax.f32 %v971_v56, 0.0 }
 0x121   : > { %v845_v61 = vpop.f32.mrf.mxu0  ;;  %v973_v62 = vpop.f32.mrf.mxu1 }
 0x122   : > { %v1740_v63 = vpack.c.bf16 %v1067_v59, %v1067_v59  ;;  %v1772_v0 = vpack.c.bf16 %v1099_v60, %v1099_v60  ;;  %v846_v1 = vadd.f32 %v2147_v15, %v845_v61  ;;  %v974_v2 = vadd.f32 %v2147_v15, %v973_v62 }
 0x123   : > { %v847_v3 = vpop.f32.mrf.mxu0  ;;  %v975_v4 = vpop.f32.mrf.mxu1 }
 0x124   : > { %1388 = vst.msk [vmem:[%s2155_s23 + $0x28] sm:$0xf] %vm1377_vm3, %v1740_v63  ;;  %1420 = vst.msk [vmem:[%s2155_s23 + $0xa8] sm:$0xf] %vm1377_vm3, %v1772_v0  ;;  %v1068_v5 = vmax.f32 %v846_v1, 0.0  ;;  %v1100_v6 = vmax.f32 %v974_v2, 0.0 }
 0x125   : > { %v850_v7 = vpop.f32.mrf.mxu0  ;;  %v978_v8 = vpop.f32.mrf.mxu1 }
 0x126   : > { %v1741_v9 = vpack.c.bf16 %v1068_v5, %v1068_v5  ;;  %v1773_v10 = vpack.c.bf16 %v1100_v6, %v1100_v6  ;;  %v851_v11 = vadd.f32 %v2147_v15, %v850_v7  ;;  %v979_v12 = vadd.f32 %v2147_v15, %v978_v8 }
 0x127   : > { %v852_v13 = vpop.f32.mrf.mxu0  ;;  %v980_v14 = vpop.f32.mrf.mxu1 }
 0x128   : > { %1389 = vst.msk [vmem:[%s2155_s23 + $0x2c] sm:$0xf] %vm1377_vm3, %v1741_v9  ;;  %1421 = vst.msk [vmem:[%s2155_s23 + $0xac] sm:$0xf] %vm1377_vm3, %v1773_v10  ;;  %v1069_v16 = vmax.f32 %v851_v11, 0.0  ;;  %v1101_v17 = vmax.f32 %v979_v12, 0.0 }
 0x129   : > { %v853_v18 = vpop.f32.mrf.mxu0  ;;  %v981_v19 = vpop.f32.mrf.mxu1 }
 0x12a   : > { %v1742_v20 = vpack.c.bf16 %v1069_v16, %v1069_v16  ;;  %v1774_v21 = vpack.c.bf16 %v1101_v17, %v1101_v17  ;;  %v854_v22 = vadd.f32 %v2147_v15, %v853_v18  ;;  %v982_v23 = vadd.f32 %v2147_v15, %v981_v19 }
 0x12b   : > { %v855_v24 = vpop.f32.mrf.mxu0  ;;  %v983_v25 = vpop.f32.mrf.mxu1 }
 0x12c   : > { %1390 = vst.msk [vmem:[%s2155_s23 + $0x30] sm:$0xf] %vm1377_vm3, %v1742_v20  ;;  %1422 = vst.msk [vmem:[%s2155_s23 + $0xb0] sm:$0xf] %vm1377_vm3, %v1774_v21  ;;  %v1070_v26 = vmax.f32 %v854_v22, 0.0  ;;  %v1102_v27 = vmax.f32 %v982_v23, 0.0 }
 0x12d   : > { %v858_v28 = vpop.f32.mrf.mxu0  ;;  %v986_v29 = vpop.f32.mrf.mxu1 }
 0x12e   : > { %v1743_v30 = vpack.c.bf16 %v1070_v26, %v1070_v26  ;;  %v1775_v31 = vpack.c.bf16 %v1102_v27, %v1102_v27  ;;  %v859_v32 = vadd.f32 %v2147_v15, %v858_v28  ;;  %v987_v33 = vadd.f32 %v2147_v15, %v986_v29 }
 0x12f   : > { %v860_v34 = vpop.f32.mrf.mxu0  ;;  %v988_v35 = vpop.f32.mrf.mxu1 }
 0x130   : > { %1391 = vst.msk [vmem:[%s2155_s23 + $0x34] sm:$0xf] %vm1377_vm3, %v1743_v30  ;;  %1423 = vst.msk [vmem:[%s2155_s23 + $0xb4] sm:$0xf] %vm1377_vm3, %v1775_v31  ;;  %v1071_v36 = vmax.f32 %v859_v32, 0.0  ;;  %v1103_v37 = vmax.f32 %v987_v33, 0.0 }
 0x131   : > { %v861_v38 = vpop.f32.mrf.mxu0  ;;  %v989_v39 = vpop.f32.mrf.mxu1 }
 0x132   : > { %v1744_v40 = vpack.c.bf16 %v1071_v36, %v1071_v36  ;;  %v1776_v41 = vpack.c.bf16 %v1103_v37, %v1103_v37  ;;  %v862_v42 = vadd.f32 %v2147_v15, %v861_v38  ;;  %v990_v43 = vadd.f32 %v2147_v15, %v989_v39 }
 0x133   : > { %v863_v44 = vpop.f32.mrf.mxu0  ;;  %v991_v45 = vpop.f32.mrf.mxu1 }
 0x134   : > { %1392 = vst.msk [vmem:[%s2155_s23 + $0x38] sm:$0xf] %vm1377_vm3, %v1744_v40  ;;  %1424 = vst.msk [vmem:[%s2155_s23 + $0xb8] sm:$0xf] %vm1377_vm3, %v1776_v41  ;;  %v1072_v46 = vmax.f32 %v862_v42, 0.0  ;;  %v1104_v47 = vmax.f32 %v990_v43, 0.0 }
 0x135   : > { %v866_v48 = vpop.f32.mrf.mxu0  ;;  %v994_v49 = vpop.f32.mrf.mxu1 }
 0x136   : > { %v1745_v50 = vpack.c.bf16 %v1072_v46, %v1072_v46  ;;  %v1777_v51 = vpack.c.bf16 %v1104_v47, %v1104_v47  ;;  %v867_v52 = vadd.f32 %v2147_v15, %v866_v48  ;;  %v995_v53 = vadd.f32 %v2147_v15, %v994_v49 }
 0x137   : > { %v868_v54 = vpop.f32.mrf.mxu0  ;;  %v996_v55 = vpop.f32.mrf.mxu1 }
 0x138   : > { %1393 = vst.msk [vmem:[%s2155_s23 + $0x3c] sm:$0xf] %vm1377_vm3, %v1745_v50  ;;  %1425 = vst.msk [vmem:[%s2155_s23 + $0xbc] sm:$0xf] %vm1377_vm3, %v1777_v51  ;;  %v1073_v56 = vmax.f32 %v867_v52, 0.0  ;;  %v1105_v57 = vmax.f32 %v995_v53, 0.0 }
 0x139   : > { %v869_v58 = vpop.f32.mrf.mxu0  ;;  %v997_v59 = vpop.f32.mrf.mxu1 }
 0x13a   : > { %v1746_v60 = vpack.c.bf16 %v1073_v56, %v1073_v56  ;;  %v1778_v61 = vpack.c.bf16 %v1105_v57, %v1105_v57  ;;  %v870_v62 = vadd.f32 %v2147_v15, %v869_v58  ;;  %v998_v63 = vadd.f32 %v2147_v15, %v997_v59 }
 0x13b   : > { %v871_v0 = vpop.f32.mrf.mxu0  ;;  %v999_v1 = vpop.f32.mrf.mxu1 }
 0x13c   : > { %1394 = vst.msk [vmem:[%s2155_s23 + $0x40] sm:$0xf] %vm1377_vm3, %v1746_v60  ;;  %1426 = vst.msk [vmem:[%s2155_s23 + $0xc0] sm:$0xf] %vm1377_vm3, %v1778_v61  ;;  %v1074_v2 = vmax.f32 %v870_v62, 0.0  ;;  %v1106_v3 = vmax.f32 %v998_v63, 0.0 }
 0x13d   : > { %v874_v4 = vpop.f32.mrf.mxu0  ;;  %v1002_v5 = vpop.f32.mrf.mxu1 }
 0x13e   : > { %v1747_v6 = vpack.c.bf16 %v1074_v2, %v1074_v2  ;;  %v1779_v7 = vpack.c.bf16 %v1106_v3, %v1106_v3  ;;  %v875_v8 = vadd.f32 %v2147_v15, %v874_v4  ;;  %v1003_v9 = vadd.f32 %v2147_v15, %v1002_v5 }
 0x13f   : > { %v876_v10 = vpop.f32.mrf.mxu0  ;;  %v1004_v11 = vpop.f32.mrf.mxu1 }
 0x140   : > { %1395 = vst.msk [vmem:[%s2155_s23 + $0x44] sm:$0xf] %vm1377_vm3, %v1747_v6  ;;  %1427 = vst.msk [vmem:[%s2155_s23 + $0xc4] sm:$0xf] %vm1377_vm3, %v1779_v7  ;;  %v1075_v12 = vmax.f32 %v875_v8, 0.0  ;;  %v1107_v13 = vmax.f32 %v1003_v9, 0.0 }
 0x141   : > { %v877_v14 = vpop.f32.mrf.mxu0  ;;  %v1005_v16 = vpop.f32.mrf.mxu1 }
 0x142   : > { %v1748_v17 = vpack.c.bf16 %v1075_v12, %v1075_v12  ;;  %v1780_v18 = vpack.c.bf16 %v1107_v13, %v1107_v13  ;;  %v878_v19 = vadd.f32 %v2147_v15, %v877_v14  ;;  %v1006_v20 = vadd.f32 %v2147_v15, %v1005_v16 }
 0x143   : > { %v879_v21 = vpop.f32.mrf.mxu0  ;;  %v1007_v22 = vpop.f32.mrf.mxu1 }
 0x144   : > { %1396 = vst.msk [vmem:[%s2155_s23 + $0x48] sm:$0xf] %vm1377_vm3, %v1748_v17  ;;  %1428 = vst.msk [vmem:[%s2155_s23 + $0xc8] sm:$0xf] %vm1377_vm3, %v1780_v18  ;;  %v1076_v23 = vmax.f32 %v878_v19, 0.0  ;;  %v1108_v24 = vmax.f32 %v1006_v20, 0.0 }
 0x145   : > { %v882_v25 = vpop.f32.mrf.mxu0  ;;  %v1010_v26 = vpop.f32.mrf.mxu1 }
 0x146   : > { %v1749_v27 = vpack.c.bf16 %v1076_v23, %v1076_v23  ;;  %v1781_v28 = vpack.c.bf16 %v1108_v24, %v1108_v24  ;;  %v883_v29 = vadd.f32 %v2147_v15, %v882_v25  ;;  %v1011_v30 = vadd.f32 %v2147_v15, %v1010_v26 }
 0x147   : > { %v884_v31 = vpop.f32.mrf.mxu0  ;;  %v1012_v32 = vpop.f32.mrf.mxu1 }
 0x148   : > { %1397 = vst.msk [vmem:[%s2155_s23 + $0x4c] sm:$0xf] %vm1377_vm3, %v1749_v27  ;;  %1429 = vst.msk [vmem:[%s2155_s23 + $0xcc] sm:$0xf] %vm1377_vm3, %v1781_v28  ;;  %v1077_v33 = vmax.f32 %v883_v29, 0.0  ;;  %v1109_v34 = vmax.f32 %v1011_v30, 0.0 }
 0x149   : > { %v885_v35 = vpop.f32.mrf.mxu0  ;;  %v1013_v36 = vpop.f32.mrf.mxu1 }
 0x14a   : > { %v1750_v37 = vpack.c.bf16 %v1077_v33, %v1077_v33  ;;  %v1782_v38 = vpack.c.bf16 %v1109_v34, %v1109_v34  ;;  %v886_v39 = vadd.f32 %v2147_v15, %v885_v35  ;;  %v1014_v40 = vadd.f32 %v2147_v15, %v1013_v36 }
 0x14b   : > { %v887_v41 = vpop.f32.mrf.mxu0  ;;  %v1015_v42 = vpop.f32.mrf.mxu1 }
 0x14c   : > { %1398 = vst.msk [vmem:[%s2155_s23 + $0x50] sm:$0xf] %vm1377_vm3, %v1750_v37  ;;  %1430 = vst.msk [vmem:[%s2155_s23 + $0xd0] sm:$0xf] %vm1377_vm3, %v1782_v38  ;;  %v1078_v43 = vmax.f32 %v886_v39, 0.0  ;;  %v1110_v44 = vmax.f32 %v1014_v40, 0.0 }
 0x14d   : > { %v890_v45 = vpop.f32.mrf.mxu0  ;;  %v1018_v46 = vpop.f32.mrf.mxu1 }
 0x14e   : > { %v1751_v47 = vpack.c.bf16 %v1078_v43, %v1078_v43  ;;  %v1783_v48 = vpack.c.bf16 %v1110_v44, %v1110_v44  ;;  %v891_v49 = vadd.f32 %v2147_v15, %v890_v45  ;;  %v1019_v50 = vadd.f32 %v2147_v15, %v1018_v46 }
 0x14f   : > { %v892_v51 = vpop.f32.mrf.mxu0  ;;  %v1020_v52 = vpop.f32.mrf.mxu1 }
 0x150   : > { %1399 = vst.msk [vmem:[%s2155_s23 + $0x54] sm:$0xf] %vm1377_vm3, %v1751_v47  ;;  %1431 = vst.msk [vmem:[%s2155_s23 + $0xd4] sm:$0xf] %vm1377_vm3, %v1783_v48  ;;  %v1079_v53 = vmax.f32 %v891_v49, 0.0  ;;  %v1111_v54 = vmax.f32 %v1019_v50, 0.0 }
 0x151   : > { %v893_v55 = vpop.f32.mrf.mxu0  ;;  %v1021_v56 = vpop.f32.mrf.mxu1 }
 0x152   : > { %v1752_v57 = vpack.c.bf16 %v1079_v53, %v1079_v53  ;;  %v1784_v58 = vpack.c.bf16 %v1111_v54, %v1111_v54  ;;  %v894_v59 = vadd.f32 %v2147_v15, %v893_v55  ;;  %v1022_v60 = vadd.f32 %v2147_v15, %v1021_v56 }
 0x153   : > { %v895_v61 = vpop.f32.mrf.mxu0  ;;  %v1023_v62 = vpop.f32.mrf.mxu1 }
 0x154   : > { %1400 = vst.msk [vmem:[%s2155_s23 + $0x58] sm:$0xf] %vm1377_vm3, %v1752_v57  ;;  %1432 = vst.msk [vmem:[%s2155_s23 + $0xd8] sm:$0xf] %vm1377_vm3, %v1784_v58  ;;  %v1080_v63 = vmax.f32 %v894_v59, 0.0  ;;  %v1112_v0 = vmax.f32 %v1022_v60, 0.0 }
 0x155   : > { %v898_v1 = vpop.f32.mrf.mxu0  ;;  %v1026_v2 = vpop.f32.mrf.mxu1 }
 0x156   : > { %v1753_v3 = vpack.c.bf16 %v1080_v63, %v1080_v63  ;;  %v1785_v4 = vpack.c.bf16 %v1112_v0, %v1112_v0  ;;  %v899_v5 = vadd.f32 %v2147_v15, %v898_v1  ;;  %v1027_v6 = vadd.f32 %v2147_v15, %v1026_v2 }
 0x157   : > { %v900_v7 = vpop.f32.mrf.mxu0  ;;  %v1028_v8 = vpop.f32.mrf.mxu1 }
 0x158   : > { %1401 = vst.msk [vmem:[%s2155_s23 + $0x5c] sm:$0xf] %vm1377_vm3, %v1753_v3  ;;  %1433 = vst.msk [vmem:[%s2155_s23 + $0xdc] sm:$0xf] %vm1377_vm3, %v1785_v4  ;;  %v1081_v9 = vmax.f32 %v899_v5, 0.0  ;;  %v1113_v10 = vmax.f32 %v1027_v6, 0.0 }
 0x159   : > { %v901_v11 = vpop.f32.mrf.mxu0  ;;  %v1029_v12 = vpop.f32.mrf.mxu1 }
 0x15a   : > { %v1754_v13 = vpack.c.bf16 %v1081_v9, %v1081_v9  ;;  %v1786_v14 = vpack.c.bf16 %v1113_v10, %v1113_v10  ;;  %v902_v16 = vadd.f32 %v2147_v15, %v901_v11  ;;  %v1030_v17 = vadd.f32 %v2147_v15, %v1029_v12 }
 0x15b   : > { %v903_v18 = vpop.f32.mrf.mxu0  ;;  %v1031_v19 = vpop.f32.mrf.mxu1 }
 0x15c   : > { %1402 = vst.msk [vmem:[%s2155_s23 + $0x60] sm:$0xf] %vm1377_vm3, %v1754_v13  ;;  %1434 = vst.msk [vmem:[%s2155_s23 + $0xe0] sm:$0xf] %vm1377_vm3, %v1786_v14  ;;  %v1082_v20 = vmax.f32 %v902_v16, 0.0  ;;  %v1114_v21 = vmax.f32 %v1030_v17, 0.0 }
 0x15d   : > { %v906_v22 = vpop.f32.mrf.mxu0  ;;  %v1034_v23 = vpop.f32.mrf.mxu1 }
 0x15e   : > { %v1755_v24 = vpack.c.bf16 %v1082_v20, %v1082_v20  ;;  %v1787_v25 = vpack.c.bf16 %v1114_v21, %v1114_v21  ;;  %v907_v26 = vadd.f32 %v2147_v15, %v906_v22  ;;  %v1035_v27 = vadd.f32 %v2147_v15, %v1034_v23 }
 0x15f   : > { %v908_v28 = vpop.f32.mrf.mxu0  ;;  %v1036_v29 = vpop.f32.mrf.mxu1 }
 0x160   : > { %1403 = vst.msk [vmem:[%s2155_s23 + $0x64] sm:$0xf] %vm1377_vm3, %v1755_v24  ;;  %1435 = vst.msk [vmem:[%s2155_s23 + $0xe4] sm:$0xf] %vm1377_vm3, %v1787_v25  ;;  %v1083_v30 = vmax.f32 %v907_v26, 0.0  ;;  %v1115_v31 = vmax.f32 %v1035_v27, 0.0 }
 0x161   : > { %v909_v32 = vpop.f32.mrf.mxu0  ;;  %v1037_v33 = vpop.f32.mrf.mxu1 }
 0x162   : > { %v1756_v34 = vpack.c.bf16 %v1083_v30, %v1083_v30  ;;  %v1788_v35 = vpack.c.bf16 %v1115_v31, %v1115_v31  ;;  %v910_v36 = vadd.f32 %v2147_v15, %v909_v32  ;;  %v1038_v37 = vadd.f32 %v2147_v15, %v1037_v33 }
 0x163   : > { %v911_v38 = vpop.f32.mrf.mxu0  ;;  %v1039_v39 = vpop.f32.mrf.mxu1 }
 0x164   : > { %1404 = vst.msk [vmem:[%s2155_s23 + $0x68] sm:$0xf] %vm1377_vm3, %v1756_v34  ;;  %1436 = vst.msk [vmem:[%s2155_s23 + $0xe8] sm:$0xf] %vm1377_vm3, %v1788_v35  ;;  %v1084_v40 = vmax.f32 %v910_v36, 0.0  ;;  %v1116_v41 = vmax.f32 %v1038_v37, 0.0 }
 0x165   : > { %v914_v42 = vpop.f32.mrf.mxu0  ;;  %v1042_v43 = vpop.f32.mrf.mxu1 }
 0x166   : > { %v1757_v44 = vpack.c.bf16 %v1084_v40, %v1084_v40  ;;  %v1789_v45 = vpack.c.bf16 %v1116_v41, %v1116_v41  ;;  %v915_v46 = vadd.f32 %v2147_v15, %v914_v42  ;;  %v1043_v47 = vadd.f32 %v2147_v15, %v1042_v43 }
 0x167   : > { %v916_v48 = vpop.f32.mrf.mxu0  ;;  %v1044_v49 = vpop.f32.mrf.mxu1 }
 0x168   : > { %1405 = vst.msk [vmem:[%s2155_s23 + $0x6c] sm:$0xf] %vm1377_vm3, %v1757_v44  ;;  %1437 = vst.msk [vmem:[%s2155_s23 + $0xec] sm:$0xf] %vm1377_vm3, %v1789_v45  ;;  %v1085_v50 = vmax.f32 %v915_v46, 0.0  ;;  %v1117_v51 = vmax.f32 %v1043_v47, 0.0 }
 0x169   : > { %v917_v52 = vpop.f32.mrf.mxu0  ;;  %v1045_v53 = vpop.f32.mrf.mxu1 }
 0x16a   : > { %v1758_v54 = vpack.c.bf16 %v1085_v50, %v1085_v50  ;;  %v1790_v55 = vpack.c.bf16 %v1117_v51, %v1117_v51  ;;  %v918_v56 = vadd.f32 %v2147_v15, %v917_v52  ;;  %v1046_v57 = vadd.f32 %v2147_v15, %v1045_v53 }
 0x16b   : > { %v919_v58 = vpop.f32.mrf.mxu0  ;;  %v1047_v59 = vpop.f32.mrf.mxu1 }
 0x16c   : > { %1406 = vst.msk [vmem:[%s2155_s23 + $0x70] sm:$0xf] %vm1377_vm3, %v1758_v54  ;;  %1438 = vst.msk [vmem:[%s2155_s23 + $0xf0] sm:$0xf] %vm1377_vm3, %v1790_v55  ;;  %v1086_v60 = vmax.f32 %v918_v56, 0.0  ;;  %v1118_v61 = vmax.f32 %v1046_v57, 0.0 }
 0x16d   : > { %v922_v62 = vpop.f32.mrf.mxu0  ;;  %v1050_v63 = vpop.f32.mrf.mxu1 }
 0x16e   : > { %v1759_v0 = vpack.c.bf16 %v1086_v60, %v1086_v60  ;;  %v1791_v1 = vpack.c.bf16 %v1118_v61, %v1118_v61  ;;  %v923_v2 = vadd.f32 %v2147_v15, %v922_v62  ;;  %v1051_v3 = vadd.f32 %v2147_v15, %v1050_v63 }
 0x16f   : > { %v924_v4 = vpop.f32.mrf.mxu0  ;;  %v1052_v5 = vpop.f32.mrf.mxu1 }
 0x170   : > { %1407 = vst.msk [vmem:[%s2155_s23 + $0x74] sm:$0xf] %vm1377_vm3, %v1759_v0  ;;  %1439 = vst.msk [vmem:[%s2155_s23 + $0xf4] sm:$0xf] %vm1377_vm3, %v1791_v1  ;;  %v1087_v6 = vmax.f32 %v923_v2, 0.0  ;;  %v1119_v7 = vmax.f32 %v1051_v3, 0.0 }
 0x171   : > { %v925_v8 = vpop.f32.mrf.mxu0  ;;  %v1053_v9 = vpop.f32.mrf.mxu1 }
 0x172   : > { %v1760_v10 = vpack.c.bf16 %v1087_v6, %v1087_v6  ;;  %v1792_v11 = vpack.c.bf16 %v1119_v7, %v1119_v7  ;;  %v926_v12 = vadd.f32 %v2147_v15, %v925_v8  ;;  %v1054_v13 = vadd.f32 %v2147_v15, %v1053_v9 }
 0x173   : > { %v927_v14 = vpop.f32.mrf.mxu0  ;;  %v1055_v16 = vpop.f32.mrf.mxu1 }
 0x174   : > { %1408 = vst.msk [vmem:[%s2155_s23 + $0x78] sm:$0xf] %vm1377_vm3, %v1760_v10  ;;  %1440 = vst.msk [vmem:[%s2155_s23 + $0xf8] sm:$0xf] %vm1377_vm3, %v1792_v11  ;;  %v1088_v17 = vmax.f32 %v926_v12, 0.0  ;;  %v1120_v18 = vmax.f32 %v1054_v13, 0.0 }
 0x176   : > { %v1761_v19 = vpack.c.bf16 %v1088_v17, %v1088_v17  ;;  %v1793_v20 = vpack.c.bf16 %v1120_v18, %v1120_v18 }
 0x178   : > { %1409 = vst.msk [vmem:[%s2155_s23 + $0x7c] sm:$0xf] %vm1377_vm3, %v1761_v19  ;;  %1441 = vst.msk [vmem:[%s2155_s23 + $0xfc] sm:$0xf] %vm1377_vm3, %v1793_v20 }
 0x179 PF: > { %s13_s14 = sadd.s32 1, %s1968_s14   ;;  %s2360_s12 = smov %s1964_s13 }
 0x17a   : > { %p10_p5 = scmp.ge.s32.totalorder %s13_s14, 4   ;;  %s2361_s13 = smov %s2363_s15 }
 0x17c   :  { %12 = sbr.rel (!%p10_p5) target bundleno = 2 (0x2), region = 68 }

</bundles_post_ra>
